<compile_context>
chip_gen: v7x
topology: tpu7x:2x2x1
jax: 0.10.0
libtpu: 0.0.40
codegen_flags: <defaults>
</compile_context>

<pallas_src>
import functools

import jax
import jax.numpy as jnp
from jax.experimental import pallas as pl
from jax.experimental.pallas import tpu as pltpu


def _round_up(x, m):
    return (x + m - 1) // m * m


# ----------------------------------------------------------------------------
# Kernels
# ----------------------------------------------------------------------------
def _linear_kernel_fullk(x_ref, w_ref, b_ref, o_ref, *, apply_tanh, cast_dtype):
    """Full-K block: y = x @ W + b (+ tanh) in a single grid step per tile."""
    x = x_ref[...]
    if cast_dtype is not None:            # bf16 MXU path; accumulation stays f32
        x = x.astype(cast_dtype)
    y = jnp.dot(x, w_ref[...], preferred_element_type=jnp.float32)
    y = y + b_ref[...].astype(jnp.float32)
    if apply_tanh:                         # static flag -> fused epilogue (EUP)
        y = jnp.tanh(y)
    o_ref[...] = y.astype(o_ref.dtype)


def _linear_kernel_splitk(x_ref, w_ref, b_ref, o_ref, acc_ref, *, apply_tanh,
                          cast_dtype):
    """K-tiled reduction with resident f32 accumulator (K is the last grid axis)."""
    k = pl.program_id(2)

    @pl.when(k == 0)
    def _():
        acc_ref[...] = jnp.zeros_like(acc_ref)

    x = x_ref[...]
    if cast_dtype is not None:
        x = x.astype(cast_dtype)
    acc_ref[...] += jnp.dot(x, w_ref[...], preferred_element_type=jnp.float32)

    @pl.when(k == pl.num_programs(2) - 1)
    def _():
        y = acc_ref[...] + b_ref[...].astype(jnp.float32)
        if apply_tanh:
            y = jnp.tanh(y)
        o_ref[...] = y.astype(o_ref.dtype)


# ----------------------------------------------------------------------------
# Pallas-backed linear layer (the concrete `self._model`)
# ----------------------------------------------------------------------------
class PallasLinear:
    """y = x @ W + b with optional fused tanh; W/b padded & cast once at load."""

    def __init__(self, w, b, *, apply_tanh=False, use_bf16=True,
                 tm=512, tn=512, tk=512, vmem_budget_bytes=24 << 20):
        K, N = w.shape
        assert b.shape == (1, N), "bias must be (1, D_out)"
        self._K, self._N = K, N
        self._apply_tanh = apply_tanh

        compute_dtype = jnp.bfloat16 if use_bf16 else w.dtype
        self._compute_dtype = jnp.dtype(compute_dtype)
        in_bytes = self._compute_dtype.itemsize

        # Lane-dense output: pad N to a multiple of 128 once, here.
        Np = _round_up(N, 128)
        tn = min(tn, Np)
        if Np % tn:
            tn = 128                       # Np is always a multiple of 128
        self._Np, self._tn = Np, tn
        self._tm_max = tm

        def bufs(tk_, split):
            # Double-buffered x/w/out blocks + bias + (accumulator if split-K).
            v = 2 * (tm * tk_ + tk_ * tn) * in_bytes
            v += 2 * tm * tn * 4           # output blocks (stored via f32 epilogue)
            v += 2 * tn * 4                # bias block
            if split:
                v += tm * tn * 4           # f32 accumulator scratch
            return v

        # Collapse the K axis (2-D grid, no accumulator) when full-K blocks fit.
        if bufs(K, split=False) <= vmem_budget_bytes:
            self._tk, self._Kp = None, K
            self._vmem_est = bufs(K, split=False)
        else:
            tk_ = min(tk, _round_up(K, 128))
            while tk_ > 128 and bufs(tk_, split=True) > vmem_budget_bytes:
                tk_ //= 2
            self._tk, self._Kp = tk_, _round_up(K, tk_)
            self._vmem_est = bufs(tk_, split=True)

        # One-time weight / bias cast + padding (no per-forward HBM round trip).
        wp = w.astype(self._compute_dtype)
        if self._Kp != K or Np != N:
            wp = jnp.pad(wp, ((0, self._Kp - K), (0, Np - N)))
        bp = b.astype(jnp.float32)
        if Np != N:
            bp = jnp.pad(bp, ((0, 0), (0, Np - N)))
        self._wp, self._bp = wp, bp

    def __call__(self, x):
        B, K = x.shape
        assert K == self._K, "x / W contraction-dim mismatch"
        Np, tn = self._Np, self._tn
        # No M padding: Pallas masks the ragged trailing M block.
        tm = min(self._tm_max, _round_up(B, 8))
        cast = None if x.dtype == self._compute_dtype else self._compute_dtype
        vmem_limit = int(self._vmem_est) + (8 << 20)   # pipelining headroom

        if self._tk is None:
            # -------- 2-D grid, full-K blocks, no accumulator --------
            grid = (pl.cdiv(B, tm), Np // tn)
            out = pl.pallas_call(
                functools.partial(_linear_kernel_fullk,
                                  apply_tanh=self._apply_tanh, cast_dtype=cast),
                out_shape=jax.ShapeDtypeStruct((B, Np), x.dtype),
                grid_spec=pltpu.PrefetchScalarGridSpec(
                    num_scalar_prefetch=0,
                    grid=grid,
                    in_specs=[
                        pl.BlockSpec((tm, K), lambda i, j: (i, 0)),
                        pl.BlockSpec((K, tn), lambda i, j: (0, j)),
                        pl.BlockSpec((1, tn), lambda i, j: (0, j)),
                    ],
                    out_specs=pl.BlockSpec((tm, tn), lambda i, j: (i, j)),
                ),
                compiler_params=pltpu.CompilerParams(
                    dimension_semantics=("parallel", "parallel"),
                    vmem_limit_bytes=vmem_limit,
                ),
            )(x, self._wp, self._bp)
        else:
            # -------- 3-D grid, K reduction with resident f32 accumulator ----
            tk, Kp = self._tk, self._Kp
            # K must be zero-padded: a ragged K block would corrupt the
            # accumulation (ragged M/N blocks are safely masked by Pallas).
            xp = x if Kp == K else jnp.pad(x, ((0, 0), (0, Kp - K)))
            grid = (pl.cdiv(B, tm), Np // tn, Kp // tk)
            out = pl.pallas_call(
                functools.partial(_linear_kernel_splitk,
                                  apply_tanh=self._apply_tanh, cast_dtype=cast),
                out_shape=jax.ShapeDtypeStruct((B, Np), x.dtype),
                grid_spec=pltpu.PrefetchScalarGridSpec(
                    num_scalar_prefetch=0,
                    grid=grid,
                    in_specs=[
                        pl.BlockSpec((tm, tk), lambda i, j, k: (i, k)),
                        pl.BlockSpec((tk, tn), lambda i, j, k: (k, j)),
                        pl.BlockSpec((1, tn), lambda i, j, k: (0, j)),
                    ],
                    out_specs=pl.BlockSpec((tm, tn), lambda i, j, k: (i, j)),
                    scratch_shapes=[pltpu.VMEM((tm, tn), jnp.float32)],
                ),
                compiler_params=pltpu.CompilerParams(
                    dimension_semantics=("parallel", "parallel", "arbitrary"),
                    vmem_limit_bytes=vmem_limit,
                ),
            )(xp, self._wp, self._bp)

        return out if Np == self._N else out[:, : self._N]


# ----------------------------------------------------------------------------
# Standalone tanh transform (fallback path only; tiled over M, never a
# whole-array VMEM block). Normally fused into the linear kernel epilogue.
# ----------------------------------------------------------------------------
def _tanh_kernel(y_ref, o_ref):
    o_ref[...] = jnp.tanh(y_ref[...].astype(jnp.float32)).astype(o_ref.dtype)


def tanh_transform(y):
    M, N = y.shape
    tm = min(1024, _round_up(M, 8))
    return pl.pallas_call(
        _tanh_kernel,
        out_shape=jax.ShapeDtypeStruct(y.shape, y.dtype),
        grid=(pl.cdiv(M, tm),),
        in_specs=[pl.BlockSpec((tm, N), lambda i: (i, 0))],
        out_specs=pl.BlockSpec((tm, N), lambda i: (i, 0)),
        compiler_params=pltpu.CompilerParams(dimension_semantics=("parallel",)),
    )(y)


# Mark the provided tanh transform as fusable into the matmul epilogue.
tanh_transform.fusable_tag = "tanh"


# ----------------------------------------------------------------------------
# BaseModel equivalent (wrapper semantics preserved)
# ----------------------------------------------------------------------------
class BaseModelPallas:
    """Mirror of eva BaseModel: forward = transforms(model(x)) (or model(x))."""

    def __init__(self, transforms=None):
        self._output_transforms = transforms
        self._model = None          # set by load_model()
        self._transform_fused = False

    def load_model(self, w, b, *, use_bf16=True, **tile_kwargs):
        # Concrete synthetic model: a Pallas-backed linear layer. If the output
        # transform is the fusable tanh, fold it into the kernel epilogue.
        fuse_tanh = getattr(self._output_transforms, "fusable_tag", None) == "tanh"
        self._transform_fused = fuse_tanh
        self._model = PallasLinear(w, b, apply_tanh=fuse_tanh,
                                   use_bf16=use_bf16, **tile_kwargs)

    def model_forward(self, tensor):
        return self._model(tensor)

    def _apply_transforms(self, tensor):
        if self._output_transforms is not None and not self._transform_fused:
            tensor = self._output_transforms(tensor)
        return tensor

    def forward(self, tensor):
        out = self.model_forward(tensor)
        return self._apply_transforms(out)

    __call__ = forward


# ----------------------------------------------------------------------------
# Demo (small, unaligned shapes: ragged M block, padded N, both grid paths)
# ----------------------------------------------------------------------------
if __name__ == "__main__":
    key = jax.random.PRNGKey(0)
    kx, kw, kb = jax.random.split(key, 3)

    B, D_in, D_out = 8, 32, 16
    x = jax.random.normal(kx, (B, D_in), dtype=jnp.float32)
    w = jax.random.normal(kw, (D_in, D_out), dtype=jnp.float32) * 0.1
    b = jax.random.normal(kb, (1, D_out), dtype=jnp.float32) * 0.1

    ref_lin = x @ w + b
    ref_tanh = jnp.tanh(ref_lin)

    # 1) Fused tanh, bf16 MXU path, collapsed-K (2-D grid) kernel.
    model = BaseModelPallas(transforms=tanh_transform)
    model.load_model(w, b, use_bf16=True)
    out = jax.block_until_ready(model(x))
    assert out.shape == (B, D_out)
    assert jnp.allclose(out, ref_tanh, atol=3e-2, rtol=3e-2), "fused tanh mismatch"

    # 2) transforms=None identity path, f32 operands.
    model_id = BaseModelPallas(transforms=None)
    model_id.load_model(w, b, use_bf16=False)
    out_id = jax.block_until_ready(model_id(x))
    assert jnp.allclose(out_id, ref_lin, atol=1e-3, rtol=1e-3), "linear mismatch"

    # 3) Non-fusable transform -> standalone tiled tanh kernel.
    model_sep = BaseModelPallas(transforms=lambda t: tanh_transform(t))
    model_sep.load_model(w, b, use_bf16=False)
    out_sep = jax.block_until_ready(model_sep(x))
    assert jnp.allclose(out_sep, ref_tanh, atol=1e-3, rtol=1e-3), "separate tanh mismatch"

    # 4) Force the split-K (3-D grid, f32 accumulator) path via a tiny VMEM budget.
    model_split = BaseModelPallas(transforms=tanh_transform)
    model_split.load_model(w, b, use_bf16=True, vmem_budget_bytes=1 << 18)
    out_split = jax.block_until_ready(model_split(x))
    assert jnp.allclose(out_split, ref_tanh, atol=3e-2, rtol=3e-2), "split-K mismatch"

    print("KERNEL_OK")
</pallas_src>

<mosaic_0001>
module attributes {stable_mosaic.version = 11 : i64} {
  func.func @_linear_kernel_fullk(%arg0: i32, %arg1: i32, %arg2: memref<8x32xf32, #tpu.memory_space<vmem>>, %arg3: memref<32x128xbf16, #tpu.memory_space<vmem>>, %arg4: memref<1x128xf32, #tpu.memory_space<vmem>>, %arg5: memref<8x128xf32, #tpu.memory_space<vmem>>) attributes {dimension_semantics = [#tpu.dimension_semantics<parallel>, #tpu.dimension_semantics<parallel>], iteration_bounds = array<i64: 1, 1>, scalar_prefetch = 0 : i64, scratch_operands = 0 : i64, tpu.core_type = #tpu.core_type<tc>, window_params = [{transform_indices = @transform_0, window_bounds = array<i64: 8, 32>}, {transform_indices = @transform_1, window_bounds = array<i64: 32, 128>}, {transform_indices = @transform_2, window_bounds = array<i64: 1, 128>}, {transform_indices = @transform_3, window_bounds = array<i64: 8, 128>}]} {
    %c0 = arith.constant 0 : index
    %c0_0 = arith.constant 0 : index
    %0 = vector.load %arg2[%c0, %c0_0] : memref<8x32xf32, #tpu.memory_space<vmem>>, vector<8x32xf32>
    %1 = arith.truncf %0 : vector<8x32xf32> to vector<8x32xbf16>
    %c0_1 = arith.constant 0 : index
    %c0_2 = arith.constant 0 : index
    %2 = vector.load %arg3[%c0_1, %c0_2] : memref<32x128xbf16, #tpu.memory_space<vmem>>, vector<32x128xbf16>
    %cst = arith.constant dense<0.000000e+00> : vector<8x128xf32>
    %3 = tpu.matmul %1, %2, %cst {dimension_numbers = #tpu.dot_dimension_numbers<[1], [0], [0], [1], [0, 0, 1, 1], [], []>} : vector<8x32xbf16>, vector<32x128xbf16>, vector<8x128xf32> -> vector<8x128xf32>
    %c0_3 = arith.constant 0 : index
    %c0_4 = arith.constant 0 : index
    %4 = vector.load %arg4[%c0_3, %c0_4] : memref<1x128xf32, #tpu.memory_space<vmem>>, vector<1x128xf32>
    %5 = vector.broadcast %4 : vector<1x128xf32> to vector<8x128xf32>
    %6 = arith.addf %3, %5 : vector<8x128xf32>
    %7 = math.tanh %6 : vector<8x128xf32>
    %c0_5 = arith.constant 0 : index
    %c0_6 = arith.constant 0 : index
    %8 = vector.load %arg5[%c0_5, %c0_6] : memref<8x128xf32, #tpu.memory_space<vmem>>, vector<8x128xf32>
    tpu.vector_store %arg5[%c0_5, %c0_6], %7 {strides = array<i32>} : memref<8x128xf32, #tpu.memory_space<vmem>>, vector<8x128xf32>,
    return
  }
  func.func @transform_0(%arg0: i32, %arg1: i32) -> (i32, i32) {
    %c0_i32 = arith.constant 0 : i32
    %c0_i32_0 = arith.constant 0 : i32
    return %arg0, %c0_i32 : i32, i32
  }
  func.func @transform_1(%arg0: i32, %arg1: i32) -> (i32, i32) {
    %c0_i32 = arith.constant 0 : i32
    %c0_i32_0 = arith.constant 0 : i32
    return %c0_i32, %arg1 : i32, i32
  }
  func.func @transform_2(%arg0: i32, %arg1: i32) -> (i32, i32) {
    %c0_i32 = arith.constant 0 : i32
    %c0_i32_0 = arith.constant 0 : i32
    return %c0_i32, %arg1 : i32, i32
  }
  func.func @transform_3(%arg0: i32, %arg1: i32) -> (i32, i32) {
    %c0_i32 = arith.constant 0 : i32
    return %arg0, %arg1 : i32, i32
  }
}

</mosaic_0001>

<bundles_post_ra>
// kernel: tpu_custom_call.1
= control target key start
LH: loop header
LB: loop body
LE: loop exit
PB: predicated region body
PF: predicated region fallthrough
CT: control target
= control target key end

     0   :  { %8 = vsyncpa [#allocation3], 0  ;;  %s300_s0 = inlined_call_operand.hbm [shape: f32[8,32], index: 0, kind: input, shape index: {}]   ;;  %s301_s1 = inlined_call_operand.hbm [shape: bf16[32,128], index: 1, kind: input, shape index: {}]   ;;  %s302_s2 = inlined_call_operand.vmem [shape: f32[1,128], index: 2, kind: input, shape index: {}]   ;;  %s303_s3 = inlined_call_operand.hbm [shape: f32[8,128], index: 3, kind: output, shape index: {}]  }
   0x1   :  { %9 = vsyncpa [#allocation6], 0 }
   0x2   :  { %10 = vsyncpa [#allocation4], 0  ;;  %s227_s12 = smov [#allocation2]   ;;  %s228_s14 = smov [#allocation5]  }
   0x3   :  { %s17_s13 = sshll.u32 %s227_s12, 4  ;;  %s26_s15 = sshll.u32 %s228_s14, 4  ;;  %s18_s13 = int_to_ptr.vmem [resolvable:$true] %s17_s13  ;;  %s254_s15 = int_to_ptr.vmem [resolvable:$true] %s26_s15 }
   0x4   :  { %s155_s18 = scalar_lea.hbm %s300_s0, 128 }
   0x5   :  { %p156_p0 = scmp.ne.s32.totalorder %s300_s0, %s155_s18  ;;  %p159_p1 = scmp.lt.u32.totalorder %s155_s18, %s300_s0 }
   0x7   :  { %p161_p2 = pnand %p159_p1, %p156_p0 }
   0x9   :  { %164 = shalt.err (!%p161_p2)
}
   0xa   :  { %s165_s23 = scalar_lea.vmem %s18_s13, 128  ;;  %p170_p4 = scmp.lt.s32.totalorder %s18_s13, %s18_s13 }
   0xb   :  { %p166_p3 = scmp.ne.s32.totalorder %s18_s13, %s165_s23  ;;  %p171_p5 = scmp.lt.s32.totalorder %s165_s23, %s165_s23 }
   0xd   :  { %p172_p6 = por %p171_p5, %p170_p4 }
   0xf   :  { %p173_p7 = pnand %p172_p6, %p166_p3 }
  0x11   :  { %176 = shalt.err (!%p173_p7)
}
  0x12   :  { %20 = dma.hbm_to_vmem [thread:$0]  %s300_s0, 128, %s18_s13, [#allocation3]  }
  0x13   :  { %s177_s28 = scalar_lea.hbm %s301_s1, 256 }
  0x14   :  { %p178_p8 = scmp.ne.s32.totalorder %s301_s1, %s177_s28  ;;  %p181_p9 = scmp.lt.u32.totalorder %s177_s28, %s301_s1 }
  0x16   :  { %p183_p10 = pnand %p181_p9, %p178_p8 }
  0x18   :  { %186 = shalt.err (!%p183_p10)
}
  0x19   :  { %s187_s6 = scalar_lea.vmem %s254_s15, 256  ;;  %p192_p12 = scmp.lt.s32.totalorder %s254_s15, %s254_s15 }
  0x1a   :  { %p188_p11 = scmp.ne.s32.totalorder %s254_s15, %s187_s6  ;;  %p193_p13 = scmp.lt.s32.totalorder %s187_s6, %s187_s6 }
  0x1c   :  { %p194_p0 = por %p193_p13, %p192_p12 }
  0x1e   :  { %p195_p1 = pnand %p194_p0, %p188_p11 }
  0x20   :  { %198 = shalt.err (!%p195_p1)
}
  0x21   :  { %s229_s0 = smov 64   ;;  %s230_s7 = smov 4  }
  0x22   :  { %32 = dma.hbm_to_vmem [thread:$0]  %s301_s1, 256, %s254_s15, [#allocation6], %s229_s0, %s229_s0, %s230_s7  }
  0x23   :  { %221 = dma.done.wait [#allocation3], 128  }
  0x24   :  { %222 = vsyncadd [#allocation3], 4294967168 }
  0x25   :  { %223 = dma.done.wait [#allocation6], 256  }
  0x26   :  { %224 = vsyncadd [#allocation6], 4294967040  ;;  %v231_v0 = vmov 0.0   ;;  %vm232_vm0 = vmmov 0   ;;  %v151_v1 = vld [vmem:[#allocation5] sm:$0xff]   ;;  %v152_v2 = vld [vmem:[#allocation5 + $0x8] sm:$0xff]  }
  0x27   :  { %136 = vmatprep.subr.bf16.mxu0 %v231_v0  ;;  %140 = vmatprep.mubr.msk.bf16.mxu0 %vm232_vm0, %v231_v0  ;;  %v42_v3 = vld [vmem:[#allocation2] sm:$0xff]  ;;  %vm67_vm1 = vcmask 261120   ;;  %s233_s1 = smov [#allocation7]  }
  0x28   :  { %137 = vmatpush3.bf16.msra.mxu0 %v151_v1  ;;  %v43_v4 = vpack.c.bf16 %v42_v3, %v42_v3  ;;  %v129_v5 = vld [vmem:[%s302_s2] ss:$0 sm:$0xff]  ;;  %s119_s12 = sshll.u32 %s233_s1, 4  ;;  %s120_s12 = int_to_ptr.vmem [resolvable:$true] %s119_s12 }
  0x29   :  { %138 = vmatprep.subr.bf16.mxu0 %v231_v0  ;;  %s199_s13 = scalar_lea.vmem %s120_s12, 128  ;;  %p204_p3 = scmp.lt.s32.totalorder %s120_s12, %s120_s12 }
  0x2a   :  { %p200_p2 = scmp.ne.s32.totalorder %s120_s12, %s199_s13  ;;  %p205_p4 = scmp.lt.s32.totalorder %s199_s13, %s199_s13 }
  0x2c   :  { %139 = vmatpush3.bf16.msra.mxu0 %v152_v2  ;;  %p206_p5 = por %p205_p4, %p204_p3 }
  0x2e   :  { %p207_p6 = pnand %p206_p5, %p200_p2 }
  0x2f   :  { %141 = vmatmul.mubr.msk.bf16.vlgmr.msra.gmra.mrb[0].mxu0 %vm67_vm1, %v43_v4 }
 0x102   :  { %v105_v6 = vpop.f32.mrb[0].mxu0 }
 0x103   :  { %v106_v7 = vadd.f32 %v129_v5, %v105_v6  ;;  %v142_v8 = vpop.f32.mrb[1].mxu0 }
 0x104   :  { %v108_v9 = vpop.f32.mrb[2].mxu0 }
 0x105   :  { %153 = vtanh.f32 %v106_v7  ;;  %v143_v10 = vpop.f32.mrb[3].mxu0 }
 0x10f   :  { %v154_v11 = vpop.eup %153 }
 0x110   :  { %112 = vst [vmem:[#allocation7] sm:$0xff] %v154_v11 }
 0x111   :  { %210 = shalt.err (!%p207_p6)
}
 0x112   :  { %s211_s15 = scalar_lea.hbm %s303_s3, 128 }
 0x113   :  { %p212_p7 = scmp.ne.s32.totalorder %s303_s3, %s211_s15  ;;  %p215_p8 = scmp.lt.u32.totalorder %s211_s15, %s303_s3 }
 0x115   :  { %p217_p9 = pnand %p215_p8, %p212_p7 }
 0x117   :  { %220 = shalt.err (!%p217_p9)
}
 0x118   :  { %122 = dma.vmem_to_hbm [thread:$0]  %s120_s12, 128, %s303_s3, [#allocation4]  }
 0x119   :  { %225 = dma.done.wait [#allocation4], 128  }
 0x11a   :  { %226 = vsyncadd [#allocation4], 4294967168 }
 0x11b   :  { %126 = vsyncpa [#allocation3], 1 }
 0x11c   :  { %127 = vsyncpa [#allocation6], 1 }
 0x11d   :  { %128 = vsyncpa [#allocation4], 1 }

</bundles_post_ra>
